<compile_context>
chip_gen: v7x
topology: tpu7x:2x2x1
jax: 0.10.0
libtpu: 0.0.40
codegen_flags: <defaults>
</compile_context>

<pallas_src>
from functools import partial

import numpy as np
import jax
import jax.numpy as jnp
from jax import lax
from jax.experimental import pallas as pl
from jax.experimental.pallas import tpu as pltpu

# ----------------------------- configuration -------------------------------
N = 8            # IO pairs per task (must divide the 8-sublane tile)
H = 32           # d_latent
DH = 32          # hidden width of encoder / decoder MLPs
ALPHA = 0.0004   # unused in the eval / K=0 forward path (kept for parity)
BETA = 0.001
assert H == DH, "slab lane layout assumes H == DH"
assert 3 * H < 128
assert N > 1, "leave-one-out pooling needs N > 1"

# output lane layout of the (M, 128) result slab
OUT_ZMU = 0
OUT_ZLV = H
OUT_YS = 2 * H
OUT_LOSS = 3 * H

# -------------------------- parameter-slab layout ---------------------------
# One (400, 128) f32 slab, packed ONCE host-side.  All block row offsets are
# multiples of 8.  Weight blocks are 128-row zero-padded so every in-kernel
# matmul takes a full-width (M,128) LHS and a (128,128) RHS view.
R_W1 = 0          # rows   0:8    fused layer-1: row0 (ys) = eW1[1] lanes 0:DH
                  #                row1 (xs) = eW1[0] lanes 0:DH | dw1x lanes 2H:3H
R_EW2 = 8         # rows   8:136  encoder layer-2: rows 0:DH = eW2 (lanes 0:DH)
R_HEAD = 136      # rows 136:264  fused head: rows 0:DH = [Wmu | Wlv | Wmu@dW1z]
R_DW2 = 264       # rows 264:392  decoder layer-2: rows 2H:3H = dW2 (lanes 0:DH)
R_VEC = 392       # rows 392:400  bias / row-vector block
R_B1 = R_VEC + 0      # eb1 (lanes 0:DH); lanes 2H:3H MUST stay zero
R_EB2 = R_VEC + 1     # eb2 (lanes 0:DH)
R_BHEAD = R_VEC + 2   # [bmu | blv | bmu@dW1z + db1] (lanes 0:3H)
R_DB2 = R_VEC + 3     # db2 (lanes 0:DH)
R_W3 = R_VEC + 4      # dW3^T (lanes 0:DH)
R_DB3 = R_VEC + 5     # db3 scalar at lane 0
W_ROWS = R_VEC + 8    # 400 rows -> 200 KiB


# ------------------------------ Pallas kernel ------------------------------
def lpn_kernel(pairs_ref, w_ref, out_ref, *, batch, n_pairs):
    m = batch * n_pairs
    x = pairs_ref[...]                                      # (M, 8): [ys, xs, 0...]

    # --- MXU pass 1: encoder layer-1 pre-act (lanes 0:DH) | xs*dw1x (2H:3H) ---
    u = (jnp.dot(x, w_ref[R_W1:R_W1 + 8, :], preferred_element_type=jnp.float32)
         + w_ref[R_B1:R_B1 + 1, :])
    phi1 = jnp.maximum(u, 0.0)                              # (M, 128)

    # --- MXU pass 2: encoder layer 2 (zero RHS rows kill non-encoder lanes) ---
    phi2 = jnp.maximum(
        jnp.dot(phi1, w_ref[R_EW2:R_EW2 + 128, :], preferred_element_type=jnp.float32)
        + w_ref[R_EB2:R_EB2 + 1, :], 0.0)                   # (M,128), lanes DH:128 == 0

    # --- leave-one-out mean pooling: per-task sublane reduce + broadcast-sub ---
    phi3 = phi2.reshape(batch, n_pairs, 128)
    pooled = jnp.sum(phi3, axis=1, keepdims=True)           # (B, 1, 128)
    olo = ((pooled - phi3) * (1.0 / (n_pairs - 1))).reshape(m, 128)

    # --- MXU pass 3: fused head -> [ z_mu | z_logvar | z_mu@dW1z + db1 ] ------
    zml = (jnp.dot(olo, w_ref[R_HEAD:R_HEAD + 128, :], preferred_element_type=jnp.float32)
           + w_ref[R_BHEAD:R_BHEAD + 1, :])                 # (M, 128)

    # --- decoder: lanes 2H:3H of (zml + u) == z@dW1z + xs*dw1x + db1 exactly ---
    h1 = jnp.maximum(zml + u, 0.0)                          # garbage lanes harmless
    # --- MXU pass 4: decoder layer 2 (only RHS rows 2H:3H are nonzero) --------
    h2 = jnp.maximum(
        jnp.dot(h1, w_ref[R_DW2:R_DW2 + 128, :], preferred_element_type=jnp.float32)
        + w_ref[R_DB2:R_DB2 + 1, :], 0.0)                   # (M,128), lanes DH:128 == 0

    # final DH -> 1 projection as VPU multiply + lane reduce (no MXU pass)
    ys_pred = (jnp.sum(h2 * w_ref[R_W3:R_W3 + 1, :], axis=-1, keepdims=True)
               + w_ref[R_DB3:R_DB3 + 1, 0:1])               # (M, 1)

    # --- losses ---------------------------------------------------------------
    ys_true = x[:, 0:1]                                     # ys read directly (lane 0)
    recon_loss = 0.5 * jnp.mean((ys_pred - ys_true) ** 2)

    lane = lax.broadcasted_iota(jnp.int32, (m, 128), 1)
    mu_mask = lane < H
    lv_mask = (lane >= H) & (lane < 2 * H)
    # kl.mean() == 0.5 * ( sum(mu^2 + exp(lv) - lv) / M  -  H )
    kl_elems = (jnp.where(mu_mask, zml * zml, 0.0)
                + jnp.where(lv_mask, jnp.exp(zml) - zml, 0.0))
    kl_loss = 0.5 * (jnp.sum(kl_elems) * (1.0 / m) - H)

    loss = recon_loss + BETA * kl_loss

    # --- single lane-dense (M, 128) output slab -------------------------------
    #   lanes 0:2H -> z_mu | z_logvar, 2H:3H -> ys_pred, 3H:128 -> loss
    out = jnp.where(lane < OUT_YS, zml, jnp.where(lane < OUT_LOSS, ys_pred, loss))
    out_ref[...] = out


# ------------------------- parameter slab packing ---------------------------
def pack_params(params):
    """Pack all weights into one (400,128) f32 slab.  Call ONCE per param set."""
    def f32(a):
        return np.asarray(a, dtype=np.float32)

    slab = np.zeros((W_ROWS, 128), np.float32)
    eW1, dw1x, dW1z = f32(params["eW1"]), f32(params["dw1x"]), f32(params["dW1z"])
    Wmu, Wlv = f32(params["Wmu"]), f32(params["Wlv"])

    # pairs lanes are [ys, xs]: row 0 multiplies ys, row 1 multiplies xs
    slab[R_W1 + 0, 0:DH] = eW1[1]
    slab[R_W1 + 1, 0:DH] = eW1[0]
    slab[R_W1 + 1, 2 * H:2 * H + DH] = dw1x[0]

    slab[R_EW2:R_EW2 + DH, 0:DH] = f32(params["eW2"])

    slab[R_HEAD:R_HEAD + DH, 0:H] = Wmu
    slab[R_HEAD:R_HEAD + DH, H:2 * H] = Wlv
    slab[R_HEAD:R_HEAD + DH, 2 * H:2 * H + DH] = Wmu @ dW1z          # folded z-path

    slab[R_DW2 + 2 * H:R_DW2 + 2 * H + DH, 0:DH] = f32(params["dW2"])

    slab[R_B1, 0:DH] = f32(params["eb1"])[0]
    slab[R_EB2, 0:DH] = f32(params["eb2"])[0]
    slab[R_BHEAD, 0:H] = f32(params["bmu"])[0]
    slab[R_BHEAD, H:2 * H] = f32(params["blv"])[0]
    slab[R_BHEAD, 2 * H:2 * H + DH] = f32(params["bmu"])[0] @ dW1z + f32(params["db1"])[0]
    slab[R_DB2, 0:DH] = f32(params["db2"])[0]
    slab[R_W3, 0:DH] = f32(params["dW3"])[:, 0]
    slab[R_DB3, 0] = f32(params["db3"])[0, 0]
    return jnp.asarray(slab)


# --------------------------------- wrapper ----------------------------------
@jax.jit
def lpn_forward(pairs, wslab):
    """pairs: (B, N, 2) f32, wslab: pre-packed (400,128) f32.

    Returns (z_mu, z_logvar, ys_pred, loss)."""
    batch, n_pairs, _ = pairs.shape
    m = batch * n_pairs
    p2 = pairs.reshape(m, 2).astype(jnp.float32)
    # lanes [ys, xs, 0*6] so ys is read at lane offset 0 inside the kernel
    pairs_pad = jnp.concatenate(
        [p2[:, 1:2], p2[:, 0:1], jnp.zeros((m, 6), jnp.float32)], axis=1)

    vmem = pl.BlockSpec(memory_space=pltpu.MemorySpace.VMEM)
    out = pl.pallas_call(
        partial(lpn_kernel, batch=batch, n_pairs=n_pairs),
        out_shape=jax.ShapeDtypeStruct((m, 128), jnp.float32),
        in_specs=[vmem, vmem],
        out_specs=vmem,
    )(pairs_pad, wslab)

    z_mu = out[:, OUT_ZMU:OUT_ZMU + H].reshape(batch, n_pairs, H)
    z_lv = out[:, OUT_ZLV:OUT_ZLV + H].reshape(batch, n_pairs, H)
    ys_pred = out[:, OUT_YS:OUT_YS + 1].reshape(batch, n_pairs, 1)
    loss = out[0, OUT_LOSS]
    return z_mu, z_lv, ys_pred, loss


# ------------------------- pure-JAX reference ------------------------------
def make_leave_one_out(x, axis):
    assert axis == 1
    n = x.shape[1]
    idx = jnp.stack(
        [jnp.concatenate([jnp.arange(i), jnp.arange(i + 1, n)]) for i in range(n)])
    return x[:, idx, ...]                                    # (B, N, N-1, ...)


def lpn_reference(pairs, params):
    p = params
    pairs_olo = make_leave_one_out(pairs, axis=1)            # (B, N, N-1, 2)
    phi = jnp.maximum(pairs_olo @ p["eW1"] + p["eb1"], 0.0)
    phi = jnp.maximum(phi @ p["eW2"] + p["eb2"], 0.0)
    pooled = jnp.mean(phi, axis=2)                           # (B, N, DH)
    z_mu = pooled @ p["Wmu"] + p["bmu"]
    z_lv = pooled @ p["Wlv"] + p["blv"]
    z = z_mu
    kl = -0.5 * jnp.sum(1.0 + z_lv - z_mu ** 2 - jnp.exp(z_lv), axis=-1)
    kl_loss = kl.mean()
    xs = pairs[:, :, 0:1]
    ys_true = pairs[:, :, 1:2]
    dW1 = jnp.concatenate([p["dW1z"], p["dw1x"]], axis=0)    # (H+1, DH)
    z_xs = jnp.concatenate([z, xs], axis=-1)
    h = jnp.maximum(z_xs @ dW1 + p["db1"], 0.0)
    h = jnp.maximum(h @ p["dW2"] + p["db2"], 0.0)
    ys_pred = h @ p["dW3"] + p["db3"]
    recon = 0.5 * jnp.mean((ys_pred - ys_true) ** 2)
    return z_mu, z_lv, ys_pred, recon + BETA * kl_loss


# ------------------------------ parameters ---------------------------------
def init_params(key):
    def lin(k, fan_in, fan_out):
        return jax.random.normal(k, (fan_in, fan_out), jnp.float32) / jnp.sqrt(fan_in)

    ks = jax.random.split(key, 9)
    return {
        "eW1": lin(ks[0], 2, DH),      "eb1": jnp.zeros((1, DH), jnp.float32),
        "eW2": lin(ks[1], DH, DH),     "eb2": jnp.zeros((1, DH), jnp.float32),
        "Wmu": lin(ks[2], DH, H),      "bmu": jnp.zeros((1, H), jnp.float32),
        "Wlv": lin(ks[3], DH, H),      "blv": jnp.zeros((1, H), jnp.float32),
        "dW1z": lin(ks[4], H, DH),     "dw1x": lin(ks[5], 1, DH),
        "db1": jnp.zeros((1, DH), jnp.float32),
        "dW2": lin(ks[6], DH, DH),     "db2": jnp.zeros((1, DH), jnp.float32),
        "dW3": lin(ks[7], DH, 1),      "db3": jnp.zeros((1, 1), jnp.float32),
    }


if __name__ == "__main__":
    key = jax.random.PRNGKey(0)
    k_small, k_params, k_big = jax.random.split(key, 3)
    params = init_params(k_params)
    wslab = pack_params(params)          # packed ONCE (hoisted out of per-call path)

    # small canonical case (B=2) + a batched-throughput case (B=16 -> M=128 rows)
    for bsz, kp in ((2, k_small), (16, k_big)):
        pairs = jax.random.normal(kp, (bsz, N, 2), jnp.float32)

        z_mu, z_lv, ys_pred, loss = lpn_forward(pairs, wslab)
        jax.block_until_ready((z_mu, z_lv, ys_pred, loss))

        r_mu, r_lv, r_ys, r_loss = lpn_reference(pairs, params)
        assert z_mu.shape == (bsz, N, H) and z_lv.shape == (bsz, N, H)
        assert ys_pred.shape == (bsz, N, 1)
        assert jnp.allclose(z_mu, r_mu, rtol=1e-4, atol=1e-4), "z_mu mismatch"
        assert jnp.allclose(z_lv, r_lv, rtol=1e-4, atol=1e-4), "z_logvar mismatch"
        # ys_pred / loss: the kernel folds Wmu@dW1z host-side (one fewer MXU pass).
        # Under the MXU's default (bf16-operand) f32 precision this mathematically
        # equivalent formulation can differ from the layer-by-layer reference by
        # a few 1e-3 absolute, hence the looser tolerance on the decoder outputs.
        assert jnp.allclose(ys_pred, r_ys, rtol=1e-2, atol=1e-2), \
            float(jnp.max(jnp.abs(ys_pred - r_ys)))
        assert jnp.allclose(loss, r_loss, rtol=1e-2, atol=2e-3), (float(loss), float(r_loss))

    print("KERNEL_OK")
</pallas_src>

<mosaic_0001>
module attributes {stable_mosaic.version = 11 : i64} {
  func.func @lpn_kernel(%arg0: memref<16x8xf32, #tpu.memory_space<vmem>>, %arg1: memref<400x128xf32, #tpu.memory_space<vmem>>, %arg2: memref<16x128xf32, #tpu.memory_space<vmem>>) attributes {dimension_semantics = [], scalar_prefetch = 0 : i64, scratch_operands = 0 : i64, tpu.core_type = #tpu.core_type<tc>} {
    %c0 = arith.constant 0 : index
    %c0_0 = arith.constant 0 : index
    %0 = vector.load %arg0[%c0, %c0_0] : memref<16x8xf32, #tpu.memory_space<vmem>>, vector<16x8xf32>
    %c0_1 = arith.constant 0 : index
    %c0_2 = arith.constant 0 : index
    %1 = vector.load %arg1[%c0_1, %c0_2] : memref<400x128xf32, #tpu.memory_space<vmem>>, vector<8x128xf32>
    %cst = arith.constant dense<0.000000e+00> : vector<16x128xf32>
    %2 = tpu.matmul %0, %1, %cst {dimension_numbers = #tpu.dot_dimension_numbers<[1], [0], [0], [1], [0, 0, 1, 1], [], []>} : vector<16x8xf32>, vector<8x128xf32>, vector<16x128xf32> -> vector<16x128xf32>
    %c392 = arith.constant 392 : index
    %c0_3 = arith.constant 0 : index
    %3 = vector.load %arg1[%c392, %c0_3] : memref<400x128xf32, #tpu.memory_space<vmem>>, vector<1x128xf32>
    %4 = vector.broadcast %3 : vector<1x128xf32> to vector<16x128xf32>
    %5 = arith.addf %2, %4 : vector<16x128xf32>
    %cst_4 = arith.constant 0.000000e+00 : f32
    %6 = vector.broadcast %cst_4 : f32 to vector<16x128xf32>
    %7 = arith.maximumf %5, %6 : vector<16x128xf32>
    %c8 = arith.constant 8 : index
    %c0_5 = arith.constant 0 : index
    %8 = vector.load %arg1[%c8, %c0_5] : memref<400x128xf32, #tpu.memory_space<vmem>>, vector<128x128xf32>
    %cst_6 = arith.constant dense<0.000000e+00> : vector<16x128xf32>
    %9 = tpu.matmul %7, %8, %cst_6 {dimension_numbers = #tpu.dot_dimension_numbers<[1], [0], [0], [1], [0, 0, 1, 1], [], []>} : vector<16x128xf32>, vector<128x128xf32>, vector<16x128xf32> -> vector<16x128xf32>
    %c393 = arith.constant 393 : index
    %c0_7 = arith.constant 0 : index
    %10 = vector.load %arg1[%c393, %c0_7] : memref<400x128xf32, #tpu.memory_space<vmem>>, vector<1x128xf32>
    %11 = vector.broadcast %10 : vector<1x128xf32> to vector<16x128xf32>
    %12 = arith.addf %9, %11 : vector<16x128xf32>
    %cst_8 = arith.constant 0.000000e+00 : f32
    %13 = vector.broadcast %cst_8 : f32 to vector<16x128xf32>
    %14 = arith.maximumf %12, %13 : vector<16x128xf32>
    %15 = vector.shape_cast %14 : vector<16x128xf32> to vector<2x8x128xf32>
    %cst_9 = arith.constant dense<0.000000e+00> : vector<2x128xf32>
    %16 = vector.multi_reduction <add>, %15, %cst_9 [1] : vector<2x8x128xf32> to vector<2x128xf32>
    %17 = vector.shape_cast %16 : vector<2x128xf32> to vector<2x1x128xf32>
    %18 = vector.broadcast %17 : vector<2x1x128xf32> to vector<2x8x128xf32>
    %19 = arith.subf %18, %15 : vector<2x8x128xf32>
    %cst_10 = arith.constant 0.142857149 : f32
    %20 = vector.broadcast %cst_10 : f32 to vector<2x8x128xf32>
    %21 = arith.mulf %19, %20 : vector<2x8x128xf32>
    %22 = vector.shape_cast %21 : vector<2x8x128xf32> to vector<16x128xf32>
    %c136 = arith.constant 136 : index
    %c0_11 = arith.constant 0 : index
    %23 = vector.load %arg1[%c136, %c0_11] : memref<400x128xf32, #tpu.memory_space<vmem>>, vector<128x128xf32>
    %cst_12 = arith.constant dense<0.000000e+00> : vector<16x128xf32>
    %24 = tpu.matmul %22, %23, %cst_12 {dimension_numbers = #tpu.dot_dimension_numbers<[1], [0], [0], [1], [0, 0, 1, 1], [], []>} : vector<16x128xf32>, vector<128x128xf32>, vector<16x128xf32> -> vector<16x128xf32>
    %c394 = arith.constant 394 : index
    %c0_13 = arith.constant 0 : index
    %25 = vector.load %arg1[%c394, %c0_13] : memref<400x128xf32, #tpu.memory_space<vmem>>, vector<1x128xf32>
    %26 = vector.broadcast %25 : vector<1x128xf32> to vector<16x128xf32>
    %27 = arith.addf %24, %26 : vector<16x128xf32>
    %28 = arith.addf %27, %5 : vector<16x128xf32>
    %cst_14 = arith.constant 0.000000e+00 : f32
    %29 = vector.broadcast %cst_14 : f32 to vector<16x128xf32>
    %30 = arith.maximumf %28, %29 : vector<16x128xf32>
    %c264 = arith.constant 264 : index
    %c0_15 = arith.constant 0 : index
    %31 = vector.load %arg1[%c264, %c0_15] : memref<400x128xf32, #tpu.memory_space<vmem>>, vector<128x128xf32>
    %cst_16 = arith.constant dense<0.000000e+00> : vector<16x128xf32>
    %32 = tpu.matmul %30, %31, %cst_16 {dimension_numbers = #tpu.dot_dimension_numbers<[1], [0], [0], [1], [0, 0, 1, 1], [], []>} : vector<16x128xf32>, vector<128x128xf32>, vector<16x128xf32> -> vector<16x128xf32>
    %c395 = arith.constant 395 : index
    %c0_17 = arith.constant 0 : index
    %33 = vector.load %arg1[%c395, %c0_17] : memref<400x128xf32, #tpu.memory_space<vmem>>, vector<1x128xf32>
    %34 = vector.broadcast %33 : vector<1x128xf32> to vector<16x128xf32>
    %35 = arith.addf %32, %34 : vector<16x128xf32>
    %cst_18 = arith.constant 0.000000e+00 : f32
    %36 = vector.broadcast %cst_18 : f32 to vector<16x128xf32>
    %37 = arith.maximumf %35, %36 : vector<16x128xf32>
    %c396 = arith.constant 396 : index
    %c0_19 = arith.constant 0 : index
    %38 = vector.load %arg1[%c396, %c0_19] : memref<400x128xf32, #tpu.memory_space<vmem>>, vector<1x128xf32>
    %39 = vector.broadcast %38 : vector<1x128xf32> to vector<16x128xf32>
    %40 = arith.mulf %37, %39 : vector<16x128xf32>
    %cst_20 = arith.constant dense<0.000000e+00> : vector<16xf32>
    %41 = vector.multi_reduction <add>, %40, %cst_20 [1] : vector<16x128xf32> to vector<16xf32>
    %42 = vector.shape_cast %41 : vector<16xf32> to vector<16x1xf32>
    %c397 = arith.constant 397 : index
    %c0_21 = arith.constant 0 : index
    %43 = vector.load %arg1[%c397, %c0_21] : memref<400x128xf32, #tpu.memory_space<vmem>>, vector<1x1xf32>
    %44 = vector.broadcast %43 : vector<1x1xf32> to vector<16x1xf32>
    %45 = arith.addf %42, %44 : vector<16x1xf32>
    %46 = vector.extract_strided_slice %0 {offsets = [0, 0], sizes = [16, 1], strides = [1, 1]} : vector<16x8xf32> to vector<16x1xf32>
    %47 = arith.subf %45, %46 : vector<16x1xf32>
    %48 = arith.mulf %47, %47 : vector<16x1xf32>
    %49 = vector.shape_cast %48 : vector<16x1xf32> to vector<1x16x1xf32>
    %cst_22 = arith.constant dense<0.000000e+00> : vector<1xf32>
    %50 = vector.multi_reduction <add>, %49, %cst_22 [1, 2] : vector<1x16x1xf32> to vector<1xf32>
    %51 = vector.shape_cast %50 : vector<1xf32> to vector<1x1x1xf32>
    %52 = vector.extract %51[0, 0, 0] : f32 from vector<1x1x1xf32>
    %cst_23 = arith.constant 1.600000e+01 : f32
    %53 = arith.divf %52, %cst_23 : f32
    %cst_24 = arith.constant 5.000000e-01 : f32
    %54 = arith.mulf %cst_24, %53 : f32
    %55 = tpu.iota {dimensions = array<i32: 1>} : vector<16x128xi32>
    %c32_i32 = arith.constant 32 : i32
    %56 = vector.broadcast %c32_i32 : i32 to vector<16x128xi32>
    %57 = arith.cmpi slt, %55, %56 : vector<16x128xi32>
    %c32_i32_25 = arith.constant 32 : i32
    %58 = vector.broadcast %c32_i32_25 : i32 to vector<16x128xi32>
    %59 = arith.cmpi sge, %55, %58 : vector<16x128xi32>
    %c64_i32 = arith.constant 64 : i32
    %60 = vector.broadcast %c64_i32 : i32 to vector<16x128xi32>
    %61 = arith.cmpi slt, %55, %60 : vector<16x128xi32>
    %62 = arith.andi %59, %61 : vector<16x128xi1>
    %63 = arith.mulf %27, %27 : vector<16x128xf32>
    %cst_26 = arith.constant 0.000000e+00 : f32
    %64 = vector.broadcast %cst_26 : f32 to vector<16x128xf32>
    %65 = arith.select %57, %63, %64 : vector<16x128xi1>, vector<16x128xf32>
    %66 = math.exp %27 : vector<16x128xf32>
    %67 = arith.subf %66, %27 : vector<16x128xf32>
    %cst_27 = arith.constant 0.000000e+00 : f32
    %68 = vector.broadcast %cst_27 : f32 to vector<16x128xf32>
    %69 = arith.select %62, %67, %68 : vector<16x128xi1>, vector<16x128xf32>
    %70 = arith.addf %65, %69 : vector<16x128xf32>
    %71 = vector.shape_cast %70 : vector<16x128xf32> to vector<1x16x128xf32>
    %cst_28 = arith.constant dense<0.000000e+00> : vector<1xf32>
    %72 = vector.multi_reduction <add>, %71, %cst_28 [1, 2] : vector<1x16x128xf32> to vector<1xf32>
    %73 = vector.shape_cast %72 : vector<1xf32> to vector<1x1x1xf32>
    %74 = vector.extract %73[0, 0, 0] : f32 from vector<1x1x1xf32>
    %cst_29 = arith.constant 6.250000e-02 : f32
    %75 = arith.mulf %74, %cst_29 : f32
    %cst_30 = arith.constant 3.200000e+01 : f32
    %76 = arith.subf %75, %cst_30 : f32
    %cst_31 = arith.constant 5.000000e-01 : f32
    %77 = arith.mulf %cst_31, %76 : f32
    %cst_32 = arith.constant 1.000000e-03 : f32
    %78 = arith.mulf %cst_32, %77 : f32
    %79 = arith.addf %54, %78 : f32
    %c64_i32_33 = arith.constant 64 : i32
    %80 = vector.broadcast %c64_i32_33 : i32 to vector<16x128xi32>
    %81 = arith.cmpi slt, %55, %80 : vector<16x128xi32>
    %c96_i32 = arith.constant 96 : i32
    %82 = vector.broadcast %c96_i32 : i32 to vector<16x128xi32>
    %83 = arith.cmpi slt, %55, %82 : vector<16x128xi32>
    %84 = vector.shape_cast %45 : vector<16x1xf32> to vector<16x1xf32>
    %85 = vector.broadcast %84 : vector<16x1xf32> to vector<16x128xf32>
    %86 = vector.broadcast %79 : f32 to vector<16x128xf32>
    %87 = arith.select %83, %85, %86 : vector<16x128xi1>, vector<16x128xf32>
    %88 = arith.select %81, %27, %87 : vector<16x128xi1>, vector<16x128xf32>
    %c0_34 = arith.constant 0 : index
    %c0_35 = arith.constant 0 : index
    %89 = vector.load %arg2[%c0_34, %c0_35] : memref<16x128xf32, #tpu.memory_space<vmem>>, vector<16x128xf32>
    tpu.vector_store %arg2[%c0_34, %c0_35], %88 {strides = array<i32>} : memref<16x128xf32, #tpu.memory_space<vmem>>, vector<16x128xf32>,
    return
  }
}

</mosaic_0001>

<bundles_post_ra>
// kernel: lpn_forward.1
= control target key start
LH: loop header
LB: loop body
LE: loop exit
PB: predicated region body
PF: predicated region fallthrough
CT: control target
= control target key end

     0   :  { %7 = vsyncpa [#allocation3], 0  ;;  %s836_s9 = smov [#allocation2]   ;;  %s923_s0 = inlined_call_operand.vmem [shape: f32[16,8], index: 0, kind: input, shape index: {}]   ;;  %s924_s1 = inlined_call_operand.hbm [shape: f32[400,128], index: 1, kind: input, shape index: {}]   ;;  %s925_s2 = inlined_call_operand.vmem [shape: f32[16,128], index: 2, kind: output, shape index: {}]  }
   0x1   :  { %s15_s10 = sshll.u32 %s836_s9, 4  ;;  %s812_s13 = scalar_lea.hbm %s924_s1, 6400  ;;  %s16_s10 = int_to_ptr.vmem [resolvable:$true] %s15_s10 }
   0x2   :  { %p813_p0 = scmp.ne.s32.totalorder %s924_s1, %s812_s13  ;;  %p816_p1 = scmp.lt.u32.totalorder %s812_s13, %s924_s1 }
   0x4   :  { %p818_p2 = pnand %p816_p1, %p813_p0 }
   0x6   :  { %821 = shalt.err (!%p818_p2)
}
   0x7   :  { %s822_s18 = scalar_lea.vmem %s16_s10, 6400  ;;  %p827_p4 = scmp.lt.s32.totalorder %s16_s10, %s16_s10 }
   0x8   :  { %p823_p3 = scmp.ne.s32.totalorder %s16_s10, %s822_s18  ;;  %p828_p5 = scmp.lt.s32.totalorder %s822_s18, %s822_s18 }
   0xa   :  { %p829_p6 = por %p828_p5, %p827_p4 }
   0xc   :  { %p830_p7 = pnand %p829_p6, %p823_p3 }
   0xe   :  { %833 = shalt.err (!%p830_p7)
}
   0xf   :  { %s837_s19 = smov 128   ;;  %s838_s20 = smov 8  }
  0x10   :  { %21 = dma.hbm_to_vmem [thread:$0]  %s924_s1, 6400, %s16_s10, [#allocation3], %s837_s19, %s837_s19, %s838_s20  }
  0x11   :  { %834 = dma.done.wait [#allocation3], 6400  }
  0x12   :  { %835 = vsyncadd [#allocation3], 4294960896  ;;  %vm33_vm0 = vcmask 64512   ;;  %v27_v0 = vld [vmem:[#allocation2] sm:$0xff]  ;;  %v875_v2 = vld [vmem:[%s923_s0 + $0x8] sm:$0xff]  ;;  %vm451_vm4 = vcmask 7168  }
  0x13   :  { %v870_v1 = vld [vmem:[%s923_s0] sm:$0xff]  ;;  %592 = vmatprep.subr.mxu0 %v27_v0  ;;  %v117_v3 = vld [vmem:[#allocation2 + $0x8] sm:$0xff]  ;;  %v118_v4 = vld [vmem:[#allocation2 + $0x10] sm:$0xff] }
  0x14   :  { %594 = vmatprep.mubr.msk.f32.mxu0 %vm33_vm0, %v870_v1  ;;  %v119_v5 = vld [vmem:[#allocation2 + $0x18] sm:$0xff]  ;;  %593 = vmatpush3.msra.mxu0 %v27_v0  ;;  %v702_v6 = vpack.c.bf16 %v118_v4, %v117_v3  ;;  %v120_v7 = vld [vmem:[#allocation2 + $0x20] sm:$0xff]  ;;  %v121_v9 = vld [vmem:[#allocation2 + $0x28] sm:$0xff] }
  0x15   :  { %595 = vmatmul.mubr.msk.f32.vlgmr.msra.gmra.mrb[0].mxu0 %vm33_vm0, %v875_v2  ;;  %v706_v8 = vpack.c.bf16 %v120_v7, %v119_v5  ;;  %v122_v10 = vld [vmem:[#allocation2 + $0x30] sm:$0xff]  ;;  %v123_v12 = vld [vmem:[#allocation2 + $0x38] sm:$0xff]  ;;  %v124_v13 = vld [vmem:[#allocation2 + $0x40] sm:$0xff] }
  0x16   :  { %703 = vmatprep.subr.bf16.mxu1 %v702_v6  ;;  %v710_v11 = vpack.c.bf16 %v122_v10, %v121_v9  ;;  %v714_v14 = vpack.c.bf16 %v124_v13, %v123_v12  ;;  %v125_v15 = vld [vmem:[#allocation2 + $0x48] sm:$0xff]  ;;  %v126_v16 = vld [vmem:[#allocation2 + $0x50] sm:$0xff]  ;;  %v127_v18 = vld [vmem:[#allocation2 + $0x58] sm:$0xff] }
  0x17   :  { %705 = vmatpush3.bf16.msra.mxu1 %v702_v6  ;;  %v718_v17 = vpack.c.bf16 %v126_v16, %v125_v15  ;;  %v128_v19 = vld [vmem:[#allocation2 + $0x60] sm:$0xff]  ;;  %v129_v21 = vld [vmem:[#allocation2 + $0x68] sm:$0xff]  ;;  %v130_v22 = vld [vmem:[#allocation2 + $0x70] sm:$0xff] }
  0x18   :  { %707 = vmatprep.subr.bf16.mxu1 %v706_v8  ;;  %v722_v20 = vpack.c.bf16 %v128_v19, %v127_v18  ;;  %v726_v23 = vpack.c.bf16 %v130_v22, %v129_v21  ;;  %v131_v24 = vld [vmem:[#allocation2 + $0x78] sm:$0xff]  ;;  %v132_v25 = vld [vmem:[#allocation2 + $0x80] sm:$0xff]  ;;  %v231_v27 = vld [vmem:[#allocation2 + $0x88] sm:$0xff] }
  0x19   :  { %v730_v26 = vpack.c.bf16 %v132_v25, %v131_v24  ;;  %v232_v28 = vld [vmem:[#allocation2 + $0x90] sm:$0xff]  ;;  %v233_v29 = vld [vmem:[#allocation2 + $0x98] sm:$0xff]  ;;  %v234_v31 = vld [vmem:[#allocation2 + $0xa0] sm:$0xff] }
  0x1a   :  { %v734_v30 = vpack.c.bf16 %v232_v28, %v231_v27  ;;  %v738_v32 = vpack.c.bf16 %v234_v31, %v233_v29  ;;  %v235_v33 = vld [vmem:[#allocation2 + $0xa8] sm:$0xff]  ;;  %v236_v34 = vld [vmem:[#allocation2 + $0xb0] sm:$0xff]  ;;  %v237_v43 = vld [vmem:[#allocation2 + $0xb8] sm:$0xff] }
  0x1b   :  { %709 = vmatpush3.bf16.msra.mxu1 %v706_v8  ;;  %v742_v35 = vpack.c.bf16 %v236_v34, %v235_v33  ;;  %v526_v36 = vld [vmem:[#allocation2 + $0x188] ss:$0 sm:$0xff]  ;;  %v238_v44 = vld [vmem:[#allocation2 + $0xc0] sm:$0xff]  ;;  %v240_v47 = vld [vmem:[#allocation2 + $0xd0] sm:$0xff] }
  0x1c   :  { %711 = vmatprep.subr.bf16.mxu1 %v710_v11  ;;  %735 = vmatprep.subr.bf16.mxu0 %v734_v30  ;;  %v746_v45 = vpack.c.bf16 %v238_v44, %v237_v43  ;;  %v239_v46 = vld [vmem:[#allocation2 + $0xc8] sm:$0xff]  ;;  %v241_v49 = vld [vmem:[#allocation2 + $0xd8] sm:$0xff]  ;;  %v242_v50 = vld [vmem:[#allocation2 + $0xe0] sm:$0xff] }
  0x1d   :  { %737 = vmatpush3.bf16.msra.mxu0 %v734_v30  ;;  %v750_v48 = vpack.c.bf16 %v240_v47, %v239_v46  ;;  %v754_v51 = vpack.c.bf16 %v242_v50, %v241_v49  ;;  %v243_v52 = vld [vmem:[#allocation2 + $0xe8] sm:$0xff]  ;;  %v244_v53 = vld [vmem:[#allocation2 + $0xf0] sm:$0xff]  ;;  %v245_v55 = vld [vmem:[#allocation2 + $0xf8] sm:$0xff] }
  0x1e   :  { %739 = vmatprep.subr.bf16.mxu0 %v738_v32  ;;  %v758_v54 = vpack.c.bf16 %v244_v53, %v243_v52  ;;  %v246_v56 = vld [vmem:[#allocation2 + $0x100] sm:$0xff]  ;;  %v331_v58 = vld [vmem:[#allocation2 + $0x108] sm:$0xff]  ;;  %v332_v59 = vld [vmem:[#allocation2 + $0x110] sm:$0xff] }
  0x1f   :  { %713 = vmatpush3.bf16.msra.mxu1 %v710_v11  ;;  %v762_v57 = vpack.c.bf16 %v246_v56, %v245_v55  ;;  %v333_v60 = vld [vmem:[#allocation2 + $0x118] sm:$0xff]  ;;  %v766_v61 = vpack.c.bf16 %v332_v59, %v331_v58  ;;  %v334_v62 = vld [vmem:[#allocation2 + $0x120] sm:$0xff]  ;;  %v335_v0 = vld [vmem:[#allocation2 + $0x128] sm:$0xff] }
  0x20   :  { %715 = vmatprep.subr.bf16.mxu1 %v714_v14  ;;  %v770_v63 = vpack.c.bf16 %v334_v62, %v333_v60  ;;  %v336_v3 = vld [vmem:[#allocation2 + $0x130] sm:$0xff]  ;;  %v337_v5 = vld [vmem:[#allocation2 + $0x138] sm:$0xff]  ;;  %v338_v6 = vld [vmem:[#allocation2 + $0x140] sm:$0xff] }
  0x21   :  { %741 = vmatpush3.bf16.msra.mxu0 %v738_v32  ;;  %v774_v4 = vpack.c.bf16 %v336_v3, %v335_v0  ;;  %v778_v7 = vpack.c.bf16 %v338_v6, %v337_v5  ;;  %v339_v8 = vld [vmem:[#allocation2 + $0x148] sm:$0xff]  ;;  %v340_v9 = vld [vmem:[#allocation2 + $0x150] sm:$0xff]  ;;  %v341_v11 = vld [vmem:[#allocation2 + $0x158] sm:$0xff]  ;;  %v468_v3 = vlaneseq }
  0x22   :  { %743 = vmatprep.subr.bf16.mxu0 %v742_v35  ;;  %v782_v10 = vpack.c.bf16 %v340_v9, %v339_v8  ;;  %v342_v12 = vld [vmem:[#allocation2 + $0x160] sm:$0xff]  ;;  %v532_v59 = vld [vmem:[#allocation2 + $0x18c] ss:$0 sm:$0xff] }
  0x23   :  { %717 = vmatpush3.bf16.msra.mxu1 %v714_v14  ;;  %v786_v13 = vpack.c.bf16 %v342_v12, %v341_v11  ;;  %v529_v14 = vld [vmem:[#allocation2 + $0x189] ss:$0 sm:$0xff]  ;;  %v346_v43 = vld [vmem:[#allocation2 + $0x180] sm:$0xff]  ;;  %v895_v8 = vand.u32 127, %v468_v3 }
  0x24   :  { %719 = vmatprep.subr.bf16.mxu1 %v718_v17 }
  0x25   :  { %745 = vmatpush3.bf16.msra.mxu0 %v742_v35  ;;  %vm471_vm1 = vcmp.ge.s32.totalorder %v895_v8, 32  ;;  %vm472_vm2 = vcmp.lt.s32.totalorder %v895_v8, 64  ;;  %vm470_vm5 = vcmp.lt.s32.totalorder %v895_v8, 32  ;;  %vm503_vm6 = vcmp.lt.s32.totalorder %v895_v8, 96 }
  0x26   :  { %747 = vmatprep.subr.bf16.mxu0 %v746_v45  ;;  %vm473_vm3 = vmand %vm471_vm1, %vm472_vm2 }
  0x27   :  { %721 = vmatpush3.bf16.msra.mxu1 %v718_v17 }
  0x28   :  { %723 = vmatprep.subr.bf16.mxu1 %v722_v20 }
  0x29   :  { %749 = vmatpush3.bf16.msra.mxu0 %v746_v45  ;;  %v530_v45 = vld [vmem:[#allocation2 + $0x18a] ss:$0 sm:$0xff] }
  0x2a   :  { %751 = vmatprep.subr.bf16.mxu0 %v750_v48 }
  0x2b   :  { %725 = vmatpush3.bf16.msra.mxu1 %v722_v20 }
  0x2c   :  { %727 = vmatprep.subr.bf16.mxu1 %v726_v23 }
  0x2d   :  { %753 = vmatpush3.bf16.msra.mxu0 %v750_v48 }
  0x2e   :  { %755 = vmatprep.subr.bf16.mxu0 %v754_v51 }
  0x2f   :  { %729 = vmatpush3.bf16.msra.mxu1 %v726_v23 }
  0x30   :  { %731 = vmatprep.subr.bf16.mxu1 %v730_v26 }
  0x31   :  { %757 = vmatpush3.bf16.msra.mxu0 %v754_v51 }
  0x32   :  { %759 = vmatprep.subr.bf16.mxu0 %v758_v54 }
  0x33   :  { %733 = vmatpush3.bf16.msra.mxu1 %v730_v26 }
  0x34   :  { %767 = vmatprep.subr.bf16.mxu1 %v766_v61 }
  0x35   :  { %761 = vmatpush3.bf16.msra.mxu0 %v758_v54  ;;  %v531_v54 = vld [vmem:[#allocation2 + $0x18b] ss:$0 sm:$0xff] }
  0x36   :  { %763 = vmatprep.subr.bf16.mxu0 %v762_v57 }
  0x39   :  { %765 = vmatpush3.bf16.msra.mxu0 %v762_v57 }
  0xe8   :  { %v596_v37 = vpop.f32.mrb[0].mxu0 }
  0xe9   :  { %v879_v38 = vadd.f32 %v596_v37, %v526_v36  ;;  %v106_v39 = vpop.f32.mrb[1].mxu0  ;;  %v343_v37 = vld [vmem:[#allocation2 + $0x168] sm:$0xff] }
  0xea   :  { %v881_v40 = vadd.f32 %v526_v36, %v106_v39  ;;  %v344_v39 = vld [vmem:[#allocation2 + $0x170] sm:$0xff] }
  0xeb   :  { %v116_v42 = vmax.f32 %v879_v38, 0.0 }
  0xec   :  { %v115_v41 = vmax.f32 %v881_v40, 0.0 }
  0xee   :  { %629 = vmatprep.mubr.f32.mxu1 %v115_v41  ;;  %v790_v41 = vpack.c.bf16 %v344_v39, %v343_v37 }
  0xef   :  { %630 = vmatmul.mubr.f32.vlgmr.msra.gmra.mrb[0].mxu1 %v116_v42  ;;  %v345_v42 = vld [vmem:[#allocation2 + $0x178] sm:$0xff] }
  0xf0   :  { %769 = vmatpush3.bf16.msra.mxu1 %v766_v61  ;;  %v794_v44 = vpack.c.bf16 %v346_v43, %v345_v42 }
  0xf1   :  { %771 = vmatprep.subr.bf16.mxu1 %v770_v63 }
  0xf4   :  { %773 = vmatpush3.bf16.msra.mxu1 %v770_v63 }
  0xf5   :  { %775 = vmatprep.subr.bf16.mxu1 %v774_v4 }
  0xf8   :  { %777 = vmatpush3.bf16.msra.mxu1 %v774_v4  ;;  %v533_v4 = vld [vmem:[#allocation2 + $0x18d] ss:$0 sm:$0xff] }
  0xf9   :  { %779 = vmatprep.subr.bf16.mxu1 %v778_v7 }
  0xfc   :  { %781 = vmatpush3.bf16.msra.mxu1 %v778_v7 }
  0xfd   :  { %783 = vmatprep.subr.bf16.mxu1 %v782_v10 }
 0x100   :  { %785 = vmatpush3.bf16.msra.mxu1 %v782_v10 }
 0x101   :  { %787 = vmatprep.subr.bf16.mxu1 %v786_v13 }
 0x104   :  { %789 = vmatpush3.bf16.msra.mxu1 %v786_v13 }
 0x105   :  { %791 = vmatprep.subr.bf16.mxu1 %v790_v41 }
 0x108   :  { %793 = vmatpush3.bf16.msra.mxu1 %v790_v41 }
 0x109   :  { %795 = vmatprep.subr.bf16.mxu1 %v794_v44 }
 0x10c   :  { %797 = vmatpush3.bf16.msra.mxu1 %v794_v44 }
 0x1c2   :  { %v631_v15 = vpop.f32.mrb[0].mxu1 }
 0x1c3   :  { %v210_v16 = vadd.f32 %v631_v15, %v529_v14  ;;  %v204_v17 = vpop.f32.mrb[1].mxu1 }
 0x1c4   :  { %v205_v18 = vadd.f32 %v529_v14, %v204_v17 }
 0x1c5   :  { %v214_v19 = vmax.f32 %v210_v16, 0.0 }
 0x1c6   :  { %v213_v20 = vmax.f32 %v205_v18, 0.0 }
 0x1c7   :  { %v221_v21 = vrot.slane %v214_v19, 4 }
 0x1c8   :  { %v215_v22 = vrot.slane %v213_v20, 4 }
 0x1c9   :  { %v222_v23 = vadd.f32 %v221_v21, %v214_v19 }
 0x1ca   :  { %v216_v24 = vadd.f32 %v215_v22, %v213_v20 }
 0x1cb   :  { %v223_v25 = vrot.slane %v222_v23, 2 }
 0x1cc   :  { %v217_v26 = vrot.slane %v216_v24, 2 }
 0x1cd   :  { %v224_v27 = vadd.f32 %v223_v25, %v222_v23 }
 0x1ce   :  { %v218_v28 = vadd.f32 %v217_v26, %v216_v24 }
 0x1cf   :  { %v225_v29 = vrot.slane %v224_v27, 1 }
 0x1d0   :  { %v219_v30 = vrot.slane %v218_v28, 1 }
 0x1d1   :  { %v226_v31 = vadd.f32 %v225_v29, %v224_v27 }
 0x1d2   :  { %v220_v32 = vadd.f32 %v219_v30, %v218_v28 }
 0x1d3   :  { %v228_v33 = vsub.f32 %v226_v31, %v214_v19 }
 0x1d4   :  { %v227_v34 = vsub.f32 %v220_v32, %v213_v20 }
 0x1d5   :  { %v230_v36 = vmul.f32 0.14285715, %v228_v33 }
 0x1d6   :  { %v229_v35 = vmul.f32 0.14285715, %v227_v34 }
 0x1d8   :  { %664 = vmatprep.mubr.f32.mxu0 %v229_v35 }
 0x1d9   :  { %665 = vmatmul.mubr.f32.vlgmr.msra.gmra.mrb[2].mxu0 %v230_v36 }
 0x2ac   :  { %v666_v46 = vpop.f32.mrb[2].mxu0 }
 0x2ad   :  { %v885_v47 = vadd.f32 %v666_v46, %v530_v45  ;;  %v318_v48 = vpop.f32.mrb[3].mxu0 }
 0x2ae   :  { %v887_v49 = vadd.f32 %v530_v45, %v318_v48 }
 0x2af   :  { %v328_v50 = vadd.f32 %v885_v47, %v879_v38  ;;  %v839_v38 = vmov 0   ;;  %v475_v17 = vmul.f32 %v885_v47, %v885_v47 }
 0x2b0   :  { %v327_v51 = vadd.f32 %v887_v49, %v881_v40  ;;  %806 = vset.pattern.permute.xlu0 %v839_v38  ;;  %807 = vset.pattern.permute.xlu1 %v839_v38  ;;  %v480_v40 = vmul.f32 1.442695, %v885_v47  ;;  %v478_v0 = vmul.f32 1.442695, %v887_v49 }
 0x2b1   :  { %v330_v53 = vmax.f32 %v328_v50, 0.0  ;;  %v477_v24 = vsel %vm470_vm5, %v475_v17, 0.0 }
 0x2b2   :  { %v329_v52 = vmax.f32 %v327_v51, 0.0  ;;  %808 = vpow2.f32 %v480_v40 }
 0x2b3   :  { %810 = vpow2.f32 %v478_v0 }
 0x2b4   :  { %699 = vmatprep.mubr.f32.mxu1 %v329_v52 }
 0x2b5   :  { %700 = vmatmul.mubr.f32.vlgmr.msra.gmra.mrb[2].mxu1 %v330_v53 }
 0x2bc   :  { %v809_v6 = vpop.eup %808 }
 0x2bd   :  { %v811_v9 = vpop.eup %810  ;;  %v483_v14 = vsub.f32 %v809_v6, %v885_v47 }
 0x2be   :  { %v482_v13 = vsub.f32 %v811_v9, %v887_v49 }
 0x2bf   :  { %v485_v20 = vsel %vm473_vm3, %v483_v14, 0.0 }
 0x2c0   :  { %v484_v19 = vsel %vm473_vm3, %v482_v13, 0.0 }
 0x388   :  { %v701_v55 = vpop.f32.mrb[2].mxu1 }
 0x389   :  { %v418_v56 = vpop.f32.mrb[3].mxu1  ;;  %v424_v57 = vadd.f32 %v701_v55, %v531_v54 }
 0x38a   :  { %v419_v58 = vadd.f32 %v531_v54, %v418_v56 }
 0x38b   :  { %v428_v61 = vmax.f32 %v424_v57, 0.0 }
 0x38c   :  { %v427_v60 = vmax.f32 %v419_v58, 0.0 }
 0x38d   :  { %v435_v63 = vmul.f32 %v532_v59, %v428_v61 }
 0x38e   :  { %v434_v62 = vmul.f32 %v532_v59, %v427_v60 }
 0x390   :  { %436 = vadd.xlane.f32.xlu0 %v434_v62 }
 0x394   :  { %438 = vadd.xlane.f32.xlu0 %v435_v63 }
 0x41d   :  { %v437_v5 = vpop.xlane.xlu0 %436 }
 0x41e   :  { %v445_v7 = vadd.f32 %v533_v4, %v437_v5 }
 0x420   :  { %v447_v10 = vsub.f32 %v445_v7, %v870_v1  ;;  %506 = vperm.xlu0 %806, %v445_v7   ;;  %v474_v1 = vmul.f32 %v887_v49, %v887_v49 }
 0x421   :  { %v439_v11 = vpop.xlane.xlu0 %438 }
 0x422   :  { %v446_v12 = vadd.f32 %v533_v4, %v439_v11  ;;  %v449_v16 = vmul.f32 %v447_v10, %v447_v10  ;;  %v476_v23 = vsel %vm470_vm5, %v474_v1, 0.0 }
 0x423   :  { %v486_v26 = vadd.f32 %v484_v19, %v476_v23 }
 0x424   :  { %v448_v15 = vsub.f32 %v446_v12, %v875_v2  ;;  %v452_v21 = vsel %vm451_vm4, %v449_v16, 0.0  ;;  %v487_v2 = vadd.f32 %v485_v20, %v477_v24 }
 0x426   :  { %v450_v18 = vmul.f32 %v448_v15, %v448_v15  ;;  %v488_v27 = vadd.f32 %v487_v2, %v486_v26 }
 0x428   :  { %v453_v22 = vsel %vm451_vm4, %v450_v18, 0.0 }
 0x429   :  { %v454_v25 = vadd.f32 %v453_v22, %v452_v21 }
 0x42b   :  { %455 = vadd.xlane.f32.xlu1 %v454_v25 }
 0x42f   :  { %489 = vadd.xlane.f32.xlu1 %v488_v27 }
 0x440   :  { %511 = vperm.xlu1 %807, %v446_v12  }
 0x49f   :  { %v507_v44 = vpop.permute.xlu0 %506 }
 0x4b8   :  { %v456_v28 = vpop.xlane.xlu1 %455 }
 0x4b9   :  { %v457_v29 = vrot.slane %v456_v28, 4 }
 0x4bb   :  { %v458_v30 = vadd.f32 %v457_v29, %v456_v28 }
 0x4bc   :  { %v490_v31 = vpop.xlane.xlu1 %489 }
 0x4bd   :  { %v459_v32 = vrot.slane %v458_v30, 2  ;;  %v491_v33 = vrot.slane %v490_v31, 4 }
 0x4bf   :  { %v492_v34 = vadd.f32 %v491_v33, %v490_v31  ;;  %v460_v35 = vadd.f32 %v459_v32, %v458_v30 }
 0x4c0   :  { %v512_v45 = vpop.permute.xlu1 %511 }
 0x4c1   :  { %v493_v36 = vrot.slane %v492_v34, 2  ;;  %v461_v37 = vrot.slane %v460_v35, 1 }
 0x4c3   :  { %v462_v39 = vadd.f32 %v461_v37, %v460_v35  ;;  %v494_v41 = vadd.f32 %v493_v36, %v492_v34 }
 0x4c5   :  { %798 = vpush %v462_v39  ;;  %v495_v42 = vrot.slane %v494_v41, 1 }
 0x4c7   :  { %v496_v43 = vadd.f32 %v495_v42, %v494_v41 }
 0x4c9   :  { %800 = vpush %v496_v43 }
 0x4f6   :  { %s799_s0 = spop %798 }
 0x4f7   :  { %s466_s28 = smul.f32 0.0625, %s799_s0 }
 0x4f9   :  { %s467_s3 = smul.f32 0.5, %s466_s28 }
 0x4fa   :  { %s801_s1 = spop %800 }
 0x4fb   :  { %s498_s27 = smul.f32 0.0625, %s801_s1 }
 0x4fd   :  { %s534_s29 = sadd.f32 -32.0, %s498_s27 }
 0x4ff   :  { %s500_s30 = smul.f32 0.5, %s534_s29 }
 0x501   :  { %s501_s4 = smul.f32 0.001, %s500_s30 }
 0x503   :  { %s502_s5 = sadd.f32 %s501_s4, %s467_s3 }
 0x505   :  { %v514_v46 = vstv %s502_s5 }
 0x506   :  { %v515_v48 = vsel %vm503_vm6, %v507_v44, %v514_v46  ;;  %v516_v50 = vsel %vm503_vm6, %v512_v45, %v514_v46 }
 0x507   :  { %v517_v51 = vsel %vm472_vm2, %v887_v49, %v515_v48  ;;  %v518_v52 = vsel %vm472_vm2, %v885_v47, %v516_v50 }
 0x508   :  { %519 = vst [vmem:[%s925_s2] sm:$0xff] %v517_v51  ;;  %520 = vst [vmem:[%s925_s2 + $0x8] sm:$0xff] %v518_v52 }
 0x509   :  { %525 = vsyncpa [#allocation3], 1 }

</bundles_post_ra>
